<compile_context>
chip_gen: v7x
topology: tpu7x:2x2x1
jax: 0.10.0
libtpu: 0.0.40
codegen_flags: <defaults>
</compile_context>

<pallas_src>
from typing import Optional, Union

import jax
import jax.numpy as jnp
from jax.experimental import pallas as pl
from jax.experimental.pallas import tpu as pltpu


_LANE = 128
_MAX_CHANNEL_PACK = 128   # bounds the padded (1, gc, 1, 1) mean/std VMEM tiles


def _round_up(x: int, m: int) -> int:
    return -(-x // m) * m


def _sublane_multiple(itemsize: int) -> int:
    # Minimum packing tile: (8,128) for 4-byte, (16,128) bf16, (32,128) int8/fp8.
    return {4: 8, 2: 16, 1: 32}.get(int(itemsize), 8)


def _per_buffer_byte_target() -> int:
    """Per-block payload byte target, generation-aware (best effort)."""
    target = 2 << 20                      # safe on v5e/v6e/v7x default scoped VMEM
    try:
        info = pltpu.get_tpu_info()
        name = " ".join(
            str(getattr(info, attr, ""))
            for attr in ("chip_version", "chip_name", "name")
        ).lower()
        if not name.strip():
            name = str(info).lower()
        if "v7" in name or "7x" in name:
            target = 4 << 20              # v7x: biggest blocks pay off the most
    except Exception:
        target = 2 << 20
    return target


def _largest_divisor_leq(n: int, cap: int) -> int:
    """Largest divisor of n that is <= cap (>= 1)."""
    cap = max(1, min(n, cap))
    for d in range(cap, 0, -1):
        if n % d == 0:
            return d
    return 1


def _split_spatial(n: int, last_dim: int):
    """Factor n == rows * lanes (a free, contiguous reshape of the spatial dims).

    Preference for the lane axis:
      1) the largest divisor of n that is a multiple of 128 (<= 8192): zero lane
         padding, unmasked wide stores, fully contiguous HBM rows;
      2) the divisor in [128, 2048] with the least padding when rounded up to a
         multiple of 128 (ties -> wider);
      3) the natural last spatial dim (always divides n).
    """
    if n <= _LANE:
        return 1, n
    divisors = []
    i = 1
    while i * i <= n:
        if n % i == 0:
            divisors.append(i)
            divisors.append(n // i)
        i += 1
    aligned = [d for d in divisors if d % _LANE == 0 and d <= 8192]
    if aligned:
        lanes = max(aligned)
        return n // lanes, lanes
    in_range = [d for d in divisors if _LANE <= d <= 2048]
    if in_range:
        lanes = min(in_range, key=lambda d: (_round_up(d, _LANE) / d, -d))
        return n // lanes, lanes
    return n // last_dim, last_dim


def _choose_tiling(B: int, C: int, rows: int, lanes: int,
                   itemsize: int, target_bytes: int):
    """Pick a (gb, gc, bs, bl) block of roughly `target_bytes` of VMEM payload.

    All budgeting uses PADDED sizes (sublane/lane rounding) so small trailing
    dims cannot blow up the real VMEM footprint.  gb and gc are exact divisors
    of B and C; bs/bl may leave masked ragged tails (last two dims only).
    """
    sub = _sublane_multiple(itemsize)
    budget = max(target_bytes // itemsize, sub * _LANE)   # padded elems / block
    lanes_p = _round_up(lanes, _LANE)                     # padded lane width

    if lanes_p * sub <= budget:
        bl = lanes                                        # full, contiguous rows
        max_rows = max(1, budget // lanes_p)
        rows_p = _round_up(rows, sub)
        if rows <= max_rows and rows_p * lanes_p <= budget:
            # Whole (rows, lanes) slice fits: grow into channels, then batch
            # (the small-spatial / large-batch fix).
            bs = rows
            slice_p = rows_p * lanes_p
            gc = _largest_divisor_leq(C, min(_MAX_CHANNEL_PACK, budget // slice_p))
            gb = _largest_divisor_leq(B, budget // (gc * slice_p)) if gc == C else 1
        else:
            bs = min(rows, max(sub, (max_rows // sub) * sub))
            gc, gb = 1, 1
    else:
        # Even `sub` full rows exceed the budget: take a 128-aligned lane chunk
        # (masked ragged tail) with the minimum packing-legal sublane count.
        bs = min(rows, sub)
        bl = max(_LANE, (budget // (_round_up(bs, sub) * _LANE)) * _LANE)
        gc, gb = 1, 1
    return gb, gc, bs, bl


def _denorm_kernel(x_ref, mean_ref, std_ref, o_ref):
    # x_ref/o_ref: (gb, gc, bs, bl) block of the (B, C, rows, lanes) view.
    # mean_ref/std_ref: (1, gc, 1, 1) float32 -> broadcast over batch/rows/lanes.
    # The multiply promotes to f32; only the final result is cast back.
    # TODO(synk): integer input dtypes truncate on the final cast (kornia only
    # operates on floating tensors, so this is an untouched edge case).
    o_ref[...] = (x_ref[...] * std_ref[...] + mean_ref[...]).astype(o_ref.dtype)


def _denormalize_pallas(x: jax.Array, mean_c: jax.Array, std_c: jax.Array,
                        block_bytes: Optional[int] = None) -> jax.Array:
    """x: (B, C, *spatial); mean_c/std_c: (C,) float32. Returns same shape as x."""
    shape = x.shape
    B, C = int(shape[0]), int(shape[1])
    n = 1
    for d in shape[2:]:
        n *= int(d)
    n = max(n, 1)
    last = int(shape[-1]) if len(shape) > 2 else 1

    rows, lanes = _split_spatial(n, last)
    itemsize = jnp.dtype(x.dtype).itemsize
    target = int(block_bytes) if block_bytes is not None else _per_buffer_byte_target()
    gb, gc, bs, bl = _choose_tiling(B, C, rows, lanes, itemsize, target)

    x4 = x.reshape(B, C, rows, lanes)                  # free (contiguous) reshape
    mean4 = jnp.asarray(mean_c, jnp.float32).reshape(1, C, 1, 1)
    std4 = jnp.asarray(std_c, jnp.float32).reshape(1, C, 1, 1)

    # gb | B and gc | C by construction; rows/lanes tails are masked by Pallas.
    grid = (B // gb, C // gc, pl.cdiv(rows, bs), pl.cdiv(lanes, bl))

    n_total = B * C * n
    cost = pl.CostEstimate(
        flops=2 * n_total,                             # one FMA per element
        transcendentals=0,
        bytes_accessed=2 * n_total * itemsize + 2 * C * 4,
    )

    out4 = pl.pallas_call(
        _denorm_kernel,
        out_shape=jax.ShapeDtypeStruct((B, C, rows, lanes), x.dtype),
        grid=grid,
        in_specs=[
            pl.BlockSpec((gb, gc, bs, bl), lambda b, c, r, l: (b, c, r, l)),
            pl.BlockSpec((1, gc, 1, 1), lambda b, c, r, l: (0, c, 0, 0)),
            pl.BlockSpec((1, gc, 1, 1), lambda b, c, r, l: (0, c, 0, 0)),
        ],
        out_specs=pl.BlockSpec((gb, gc, bs, bl), lambda b, c, r, l: (b, c, r, l)),
        compiler_params=pltpu.CompilerParams(
            dimension_semantics=("parallel", "parallel", "parallel", "parallel"),
        ),
        cost_estimate=cost,
        # NOTE: input_output_aliases={0: 0} is worthwhile only when x is donated
        # inside a larger jit; for a non-donated input XLA would insert a
        # defensive copy and ADD HBM traffic to this memory-bound op.
    )(x4, mean4, std4)

    return out4.reshape(shape)


class Denormalize:
    """JAX/Pallas port of kornia's Denormalize module.

    out[:, c, ...] = x[:, c, ...] * std[c] + mean[c]
    """

    def __init__(
        self,
        mean: Union[jax.Array, float],
        std: Union[jax.Array, float],
        *,
        min_pallas_elements: int = 1 << 16,
        block_bytes: Optional[int] = None,
    ) -> None:
        self.mean = mean
        self.std = std
        # Below this many elements the pallas_call's fixed per-step overhead
        # (and the fusion barrier it creates) outweighs any benefit -> use jnp.
        self._min_pallas_elements = int(min_pallas_elements)
        self._block_bytes = block_bytes            # override for tests/tuning

    def _as_channel_vec(self, v, num_channels: int) -> jax.Array:
        if isinstance(v, (float, int)):
            return jnp.full((num_channels,), float(v), dtype=jnp.float32)
        v = jnp.asarray(v, dtype=jnp.float32).reshape(-1)  # accepts (C,), (1, C)
        if v.shape[0] == 1:
            v = jnp.broadcast_to(v, (num_channels,))
        if v.shape[0] != num_channels:
            raise ValueError(
                "mean/std length and number of channels do not match. "
                f"Got {v.shape[0]} and {num_channels}."
            )
        return v

    def __call__(self, x: jax.Array) -> jax.Array:
        shape = x.shape
        if len(shape) < 2:
            raise ValueError(f"Expected input of shape (B, C, *). Got {shape}.")
        C = int(shape[1])
        mean_c = self._as_channel_vec(self.mean, C)
        std_c = self._as_channel_vec(self.std, C)

        n_elem = 1
        for d in shape:
            n_elem *= int(d)
        if n_elem == 0 or n_elem < self._min_pallas_elements:
            # Tiny/empty tensors: let XLA fuse the trivial FMA with neighbours.
            bshape = (1, C) + (1,) * (len(shape) - 2)
            std_b = std_c.astype(x.dtype).reshape(bshape)
            mean_b = mean_c.astype(x.dtype).reshape(bshape)
            return x * std_b + mean_b
        return _denormalize_pallas(x, mean_c, std_c, block_bytes=self._block_bytes)

    def __repr__(self) -> str:
        return self.__class__.__name__ + f"(mean={self.mean}, std={self.std})"


if __name__ == "__main__":
    key = jax.random.PRNGKey(0)
    k1, k2, k3, k4 = jax.random.split(key, 4)

    # --- (a) 4-D NCHW f32 through Pallas (channel+batch packed path) ---------
    B, C, H, W = 2, 4, 16, 16
    x = jax.random.uniform(k1, (B, C, H, W), dtype=jnp.float32)
    mean = jnp.arange(C, dtype=jnp.float32) * 0.1           # (C,)
    std = 255.0 * jnp.ones((1, C), dtype=jnp.float32)       # (1, C) like kornia
    out = jax.block_until_ready(Denormalize(mean, std, min_pallas_elements=0)(x))
    ref = x * std.reshape(1, C, 1, 1) + mean.reshape(1, C, 1, 1)
    assert out.shape == x.shape
    assert jnp.allclose(out, ref, atol=1e-5, rtol=1e-5)

    # --- (b) 5-D video-style input (lanes not 128-aligned) -------------------
    x5 = jax.random.uniform(k2, (1, 4, 3, 3, 3), dtype=jnp.float32)
    out5 = jax.block_until_ready(Denormalize(mean, std, min_pallas_elements=0)(x5))
    ref5 = x5 * std.reshape(1, C, 1, 1, 1) + mean.reshape(1, C, 1, 1, 1)
    assert out5.shape == x5.shape
    assert jnp.allclose(out5, ref5, atol=1e-5, rtol=1e-5)

    # --- (c) lane-chunked path with a masked ragged lane tail ----------------
    C3 = 3
    xc = jax.random.uniform(k3, (2, C3, 36, 640), dtype=jnp.float32)
    mean3 = jnp.array([0.1, 0.2, 0.3], dtype=jnp.float32)
    std3 = jnp.array([255.0, 128.0, 64.0], dtype=jnp.float32)
    outc = jax.block_until_ready(
        Denormalize(mean3, std3, min_pallas_elements=0, block_bytes=64 << 10)(xc))
    refc = xc * std3.reshape(1, C3, 1, 1) + mean3.reshape(1, C3, 1, 1)
    assert outc.shape == xc.shape
    assert jnp.allclose(outc, refc, atol=1e-4, rtol=1e-5)

    # --- (d) bf16 input (dtype-aware sublane packing, f32 compute) -----------
    xb = jax.random.uniform(k4, (B, C, H, W), dtype=jnp.float32).astype(jnp.bfloat16)
    outb = jax.block_until_ready(Denormalize(mean, std, min_pallas_elements=0)(xb))
    refb = (xb.astype(jnp.float32) * std.reshape(1, C, 1, 1)
            + mean.reshape(1, C, 1, 1)).astype(jnp.bfloat16)
    assert outb.dtype == jnp.bfloat16
    assert jnp.allclose(outb.astype(jnp.float32), refb.astype(jnp.float32),
                        atol=1.0, rtol=1e-2)

    # --- (e) float scalar mean/std via the small-input jnp fallback ----------
    out2 = jax.block_until_ready(Denormalize(0.0, 255.0)(x))
    assert jnp.allclose(out2, x * 255.0, atol=1e-5, rtol=1e-5)

    print("KERNEL_OK")
</pallas_src>

<mosaic_0001>
module attributes {stable_mosaic.version = 11 : i64} {
  func.func @_denorm_kernel(%arg0: i32, %arg1: i32, %arg2: i32, %arg3: i32, %arg4: memref<2x4x1x256xf32, #tpu.memory_space<vmem>>, %arg5: memref<1x4x1x1xf32, #tpu.memory_space<vmem>>, %arg6: memref<1x4x1x1xf32, #tpu.memory_space<vmem>>, %arg7: memref<2x4x1x256xf32, #tpu.memory_space<vmem>>) attributes {dimension_semantics = [#tpu.dimension_semantics<parallel>, #tpu.dimension_semantics<parallel>, #tpu.dimension_semantics<parallel>, #tpu.dimension_semantics<parallel>], iteration_bounds = array<i64: 1, 1, 1, 1>, scalar_prefetch = 0 : i64, scratch_operands = 0 : i64, tpu.core_type = #tpu.core_type<tc>, window_params = [{transform_indices = @transform_0, window_bounds = array<i64: 2, 4, 1, 256>}, {transform_indices = @transform_1, window_bounds = array<i64: 1, 4, 1, 1>}, {transform_indices = @transform_2, window_bounds = array<i64: 1, 4, 1, 1>}, {transform_indices = @transform_3, window_bounds = array<i64: 2, 4, 1, 256>}]} {
    %c0 = arith.constant 0 : index
    %c0_0 = arith.constant 0 : index
    %c0_1 = arith.constant 0 : index
    %c0_2 = arith.constant 0 : index
    %0 = vector.load %arg4[%c0, %c0_0, %c0_1, %c0_2] : memref<2x4x1x256xf32, #tpu.memory_space<vmem>>, vector<2x4x1x256xf32>
    %c0_3 = arith.constant 0 : index
    %c0_4 = arith.constant 0 : index
    %c0_5 = arith.constant 0 : index
    %c0_6 = arith.constant 0 : index
    %1 = vector.load %arg6[%c0_3, %c0_4, %c0_5, %c0_6] : memref<1x4x1x1xf32, #tpu.memory_space<vmem>>, vector<1x4x1x1xf32>
    %2 = vector.broadcast %1 : vector<1x4x1x1xf32> to vector<2x4x1x256xf32>
    %3 = arith.mulf %0, %2 : vector<2x4x1x256xf32>
    %c0_7 = arith.constant 0 : index
    %c0_8 = arith.constant 0 : index
    %c0_9 = arith.constant 0 : index
    %c0_10 = arith.constant 0 : index
    %4 = vector.load %arg5[%c0_7, %c0_8, %c0_9, %c0_10] : memref<1x4x1x1xf32, #tpu.memory_space<vmem>>, vector<1x4x1x1xf32>
    %5 = vector.broadcast %4 : vector<1x4x1x1xf32> to vector<2x4x1x256xf32>
    %6 = arith.addf %3, %5 : vector<2x4x1x256xf32>
    %c0_11 = arith.constant 0 : index
    %c0_12 = arith.constant 0 : index
    %c0_13 = arith.constant 0 : index
    %c0_14 = arith.constant 0 : index
    %7 = vector.load %arg7[%c0_11, %c0_12, %c0_13, %c0_14] : memref<2x4x1x256xf32, #tpu.memory_space<vmem>>, vector<2x4x1x256xf32>
    tpu.vector_store %arg7[%c0_11, %c0_12, %c0_13, %c0_14], %6 {strides = array<i32>} : memref<2x4x1x256xf32, #tpu.memory_space<vmem>>, vector<2x4x1x256xf32>,
    return
  }
  func.func @transform_0(%arg0: i32, %arg1: i32, %arg2: i32, %arg3: i32) -> (i32, i32, i32, i32) {
    %c0_i32 = arith.constant 0 : i32
    return %arg0, %arg1, %arg2, %arg3 : i32, i32, i32, i32
  }
  func.func @transform_1(%arg0: i32, %arg1: i32, %arg2: i32, %arg3: i32) -> (i32, i32, i32, i32) {
    %c0_i32 = arith.constant 0 : i32
    %c0_i32_0 = arith.constant 0 : i32
    %c0_i32_1 = arith.constant 0 : i32
    %c0_i32_2 = arith.constant 0 : i32
    return %c0_i32, %arg1, %c0_i32_0, %c0_i32_1 : i32, i32, i32, i32
  }
  func.func @transform_2(%arg0: i32, %arg1: i32, %arg2: i32, %arg3: i32) -> (i32, i32, i32, i32) {
    %c0_i32 = arith.constant 0 : i32
    %c0_i32_0 = arith.constant 0 : i32
    %c0_i32_1 = arith.constant 0 : i32
    %c0_i32_2 = arith.constant 0 : i32
    return %c0_i32, %arg1, %c0_i32_0, %c0_i32_1 : i32, i32, i32, i32
  }
  func.func @transform_3(%arg0: i32, %arg1: i32, %arg2: i32, %arg3: i32) -> (i32, i32, i32, i32) {
    %c0_i32 = arith.constant 0 : i32
    return %arg0, %arg1, %arg2, %arg3 : i32, i32, i32, i32
  }
}

</mosaic_0001>

<bundles_post_ra>
// kernel: tpu_custom_call.1
= control target key start
LH: loop header
LB: loop body
LE: loop exit
PB: predicated region body
PF: predicated region fallthrough
CT: control target
= control target key end

     0   :  { %8 = vsyncpa [#allocation3], 0  ;;  %s316_s0 = inlined_call_operand.hbm [shape: f32[2,4,1,256], index: 0, kind: input, shape index: {}]   ;;  %s317_s1 = inlined_call_operand.vmem [shape: f32[1,4,1,1], index: 1, kind: input, shape index: {}]   ;;  %s318_s2 = inlined_call_operand.vmem [shape: f32[1,4,1,1], index: 2, kind: input, shape index: {}]   ;;  %s319_s3 = inlined_call_operand.hbm [shape: f32[2,4,1,256], index: 3, kind: output, shape index: {}]  }
   0x1   :  { %9 = vsyncpa [#allocation4], 0  ;;  %s217_s12 = smov [#allocation2]   ;;  %s169_s16 = scalar_lea.hbm %s316_s0, 256 }
   0x2   :  { %s15_s13 = sshll.u32 %s217_s12, 4  ;;  %p170_p0 = scmp.ne.s32.totalorder %s316_s0, %s169_s16  ;;  %s16_s13 = int_to_ptr.vmem [resolvable:$true] %s15_s13 }
   0x3   :  { %p173_p1 = scmp.lt.u32.totalorder %s169_s16, %s316_s0 }
   0x5   :  { %p175_p2 = pnand %p173_p1, %p170_p0 }
   0x7   :  { %178 = shalt.err (!%p175_p2)
}
   0x8   :  { %s179_s21 = scalar_lea.vmem %s16_s13, 256  ;;  %p184_p4 = scmp.lt.s32.totalorder %s16_s13, %s16_s13 }
   0x9   :  { %p180_p3 = scmp.ne.s32.totalorder %s16_s13, %s179_s21  ;;  %p185_p5 = scmp.lt.s32.totalorder %s179_s21, %s179_s21 }
   0xb   :  { %p186_p6 = por %p185_p5, %p184_p4 }
   0xd   :  { %p187_p7 = pnand %p186_p6, %p180_p3 }
   0xf   :  { %190 = shalt.err (!%p187_p7)
}
  0x10   :  { %s218_s22 = smov 32   ;;  %s219_s23 = smov 2  }
  0x11   :  { %21 = dma.hbm_to_vmem [thread:$0]  %s316_s0, 256, %s16_s13, [#allocation3], %s218_s22, %s218_s22, %s219_s23  }
  0x12   :  { %213 = dma.done.wait [#allocation3], 256  }
  0x13   :  { %214 = vsyncadd [#allocation3], 4294967040  ;;  %v220_v0 = vmov 0   ;;  %v39_v1 = vld [vmem:[%s318_s2 + $0x2] sm:$0x1]  ;;  %v46_v9 = vlaneseq }
  0x14   :  { %168 = vset.pattern.permute.xlu1 %v220_v0  ;;  %167 = vset.pattern.permute.xlu0 %v220_v0  ;;  %v37_v2 = vld [vmem:[%s318_s2] sm:$0x1]  ;;  %v40_v3 = vld [vmem:[%s318_s2 + $0x3] sm:$0x1]  ;;  %v38_v4 = vld [vmem:[%s318_s2 + $0x1] sm:$0x1] }
  0x15   :  { %61 = vperm.xlu1 %168, %v39_v1   ;;  %43 = vperm.xlu0 %167, %v37_v2   ;;  %v86_v5 = vld [vmem:[%s317_s1 + $0x1] sm:$0x1]  ;;  %v85_v6 = vld [vmem:[%s317_s1] sm:$0x1]  ;;  %v88_v7 = vld [vmem:[%s317_s1 + $0x3] sm:$0x1] }
  0x16   :  { %v87_v8 = vld [vmem:[%s317_s1 + $0x2] sm:$0x1]  ;;  %v47_v10 = vshrl.u32 %v46_v9, 7  ;;  %v29_v17 = vld [vmem:[#allocation2] sm:$0x3]  ;;  %vm281_vm0 = vcmp.lt.s32.totalorder %v46_v9, 256 }
  0x17   :  { %v33_v18 = vld [vmem:[#allocation2 + $0x8] sm:$0x3]  ;;  %v30_v20 = vld [vmem:[#allocation2 + $0x2] sm:$0x3]  ;;  %v34_v21 = vld [vmem:[#allocation2 + $0xa] sm:$0x3] }
  0x18   :  { %v48_v11 = vsub.s32 0, %v47_v10  ;;  %v31_v28 = vld [vmem:[#allocation2 + $0x4] sm:$0x3]  ;;  %v35_v29 = vld [vmem:[#allocation2 + $0xc] sm:$0x3]  ;;  %s221_s1 = smov [#allocation5]  }
  0x19   :  { %70 = vperm.xlu1 %168, %v40_v3   ;;  %52 = vperm.xlu0 %167, %v38_v4   ;;  %v32_v34 = vld [vmem:[#allocation2 + $0x6] sm:$0x3]  ;;  %v36_v35 = vld [vmem:[#allocation2 + $0xe] sm:$0x3]  ;;  %s150_s2 = sshll.u32 %s221_s1, 4  ;;  %s151_s2 = int_to_ptr.vmem [resolvable:$true] %s150_s2 }
  0x1a   :  { %s191_s14 = scalar_lea.vmem %s151_s2, 256  ;;  %p196_p9 = scmp.lt.s32.totalorder %s151_s2, %s151_s2 }
  0x1b   :  { %p192_p8 = scmp.ne.s32.totalorder %s151_s2, %s191_s14  ;;  %p197_p10 = scmp.lt.s32.totalorder %s191_s14, %s191_s14 }
  0x1d   :  { %100 = vperm.xlu1 %168, %v86_v5   ;;  %91 = vperm.xlu0 %167, %v85_v6   ;;  %p198_p11 = por %p197_p10, %p196_p9 }
  0x1f   :  { %p199_p12 = pnand %p198_p11, %p192_p8 }
  0x21   :  { %118 = vperm.xlu1 %168, %v88_v7   ;;  %109 = vperm.xlu0 %167, %v87_v8  }
  0x94   :  { %v62_v12 = vpop.permute.xlu1 %61  ;;  %v44_v13 = vpop.permute.xlu0 %43 }
  0x95   :  { %v49_v14 = vrot.slane %v44_v13, %v48_v11  ;;  %v67_v22 = vrot.slane %v62_v12, %v48_v11 }
  0x97   :  { %v77_v23 = vmul.f32 %v49_v14, %v29_v17  ;;  %v81_v24 = vmul.f32 %v49_v14, %v33_v18  ;;  %v79_v41 = vmul.f32 %v67_v22, %v31_v28  ;;  %v83_v42 = vmul.f32 %v67_v22, %v35_v29 }
  0x98   :  { %v71_v15 = vpop.permute.xlu1 %70  ;;  %v53_v16 = vpop.permute.xlu0 %52 }
  0x99   :  { %v58_v19 = vrot.slane %v53_v16, %v48_v11  ;;  %v76_v25 = vrot.slane %v71_v15, %v48_v11 }
  0x9b   :  { %v78_v30 = vmul.f32 %v58_v19, %v30_v20  ;;  %v82_v31 = vmul.f32 %v58_v19, %v34_v21  ;;  %v80_v45 = vmul.f32 %v76_v25, %v32_v34  ;;  %v84_v46 = vmul.f32 %v76_v25, %v36_v35 }
  0x9c   :  { %v101_v26 = vpop.permute.xlu1 %100  ;;  %v92_v27 = vpop.permute.xlu0 %91 }
  0x9d   :  { %v106_v32 = vrot.slane %v101_v26, %v48_v11  ;;  %v97_v33 = vrot.slane %v92_v27, %v48_v11 }
  0x9f   :  { %v126_v37 = vadd.f32 %v106_v32, %v78_v30  ;;  %v130_v38 = vadd.f32 %v106_v32, %v82_v31  ;;  %v125_v39 = vadd.f32 %v97_v33, %v77_v23  ;;  %v129_v40 = vadd.f32 %v97_v33, %v81_v24 }
  0xa0   :  { %v119_v43 = vpop.permute.xlu1 %118  ;;  %v110_v44 = vpop.permute.xlu0 %109 }
  0xa1   :  { %138 = vst.msk [vmem:[#allocation5 + $0x2] sm:$0x3] %vm281_vm0, %v126_v37  ;;  %142 = vst.msk [vmem:[#allocation5 + $0xa] sm:$0x3] %vm281_vm0, %v130_v38  ;;  %v124_v47 = vrot.slane %v119_v43, %v48_v11  ;;  %v115_v48 = vrot.slane %v110_v44, %v48_v11 }
  0xa2   :  { %137 = vst.msk [vmem:[#allocation5] sm:$0x3] %vm281_vm0, %v125_v39  ;;  %141 = vst.msk [vmem:[#allocation5 + $0x8] sm:$0x3] %vm281_vm0, %v129_v40 }
  0xa3   :  { %v128_v49 = vadd.f32 %v124_v47, %v80_v45  ;;  %v132_v50 = vadd.f32 %v124_v47, %v84_v46  ;;  %v127_v51 = vadd.f32 %v115_v48, %v79_v41  ;;  %v131_v52 = vadd.f32 %v115_v48, %v83_v42 }
  0xa5   :  { %140 = vst.msk [vmem:[#allocation5 + $0x6] sm:$0x3] %vm281_vm0, %v128_v49  ;;  %144 = vst.msk [vmem:[#allocation5 + $0xe] sm:$0x3] %vm281_vm0, %v132_v50 }
  0xa6   :  { %139 = vst.msk [vmem:[#allocation5 + $0x4] sm:$0x3] %vm281_vm0, %v127_v51  ;;  %143 = vst.msk [vmem:[#allocation5 + $0xc] sm:$0x3] %vm281_vm0, %v131_v52 }
  0xa7   :  { %202 = shalt.err (!%p199_p12)
}
  0xa8   :  { %s203_s17 = scalar_lea.hbm %s319_s3, 256 }
  0xa9   :  { %p204_p13 = scmp.ne.s32.totalorder %s319_s3, %s203_s17  ;;  %p207_p0 = scmp.lt.u32.totalorder %s203_s17, %s319_s3 }
  0xab   :  { %p209_p1 = pnand %p207_p0, %p204_p13 }
  0xad   :  { %212 = shalt.err (!%p209_p1)
}
  0xae   :  { %156 = dma.vmem_to_hbm [thread:$0]  %s151_s2, 256, %s319_s3, [#allocation4], %s218_s22, %s218_s22, %s219_s23  }
  0xaf   :  { %215 = dma.done.wait [#allocation4], 256  }
  0xb0   :  { %216 = vsyncadd [#allocation4], 4294967040 }
  0xb1   :  { %160 = vsyncpa [#allocation3], 1 }
  0xb2   :  { %161 = vsyncpa [#allocation4], 1 }

</bundles_post_ra>
